<compile_context>
chip_gen: v5e
topology: v5e:2x2
jax: 0.10.0
libtpu: 0.0.40
codegen_flags: <defaults>
</compile_context>

<pallas_src>
import functools

import jax
import jax.numpy as jnp
from jax.experimental import pallas as pl
from jax.experimental.pallas import tpu as pltpu


_VMEM_LIMIT = 48 * 1024 * 1024  # conservative: fits v7x (64 MiB physical)


def _round_up(x, m):
    return ((x + m - 1) // m) * m


def _flatten_2d(x):
    lead = x.shape[:-1]
    return x.reshape((-1, x.shape[-1])), lead


# ----------------------------------------------------------------------------
# Kernels
# ----------------------------------------------------------------------------

def _linear_kernel(x_ref, w_ref, b_ref, o_ref, acc_ref):
    # y = x @ W_t + b, W_t pre-transposed to (K, N) in the wrapper/init.
    k = pl.program_id(2)

    @pl.when(k == 0)
    def _():
        acc_ref[...] = jnp.zeros_like(acc_ref)

    acc_ref[...] += jnp.dot(x_ref[...], w_ref[...],
                            preferred_element_type=jnp.float32)

    @pl.when(k == pl.num_programs(2) - 1)
    def _():
        o_ref[...] = (acc_ref[...] + b_ref[...].astype(jnp.float32)
                      ).astype(o_ref.dtype)


def _layernorm_kernel(x_ref, g_ref, b_ref, o_ref, *, eps):
    # nn.LayerNorm over the last dim with elementwise affine (f32 stats).
    x = x_ref[...].astype(jnp.float32)
    mean = jnp.mean(x, axis=-1, keepdims=True)
    xc = x - mean                                     # reused for var + norm
    var = jnp.mean(xc * xc, axis=-1, keepdims=True)
    y = xc * jax.lax.rsqrt(var + eps)                 # EUP rsqrt
    g = g_ref[...].astype(jnp.float32)
    b = b_ref[...].astype(jnp.float32)
    o_ref[...] = (y * g + b).astype(o_ref.dtype)


def _affine_kernel(x_ref, w_ref, b_ref, o_ref):
    # Affine: x * weight + bias (f32 params, f32 math, cast back to x dtype).
    x = x_ref[...].astype(jnp.float32)
    o_ref[...] = (x * w_ref[...] + b_ref[...]).astype(o_ref.dtype)


# ----------------------------------------------------------------------------
# Wrappers
# ----------------------------------------------------------------------------

def linear_layer(x, weight_t, bias):
    """nn.Linear.  weight_t is the pre-transposed weight, shape (K, N)."""
    x2d, lead = _flatten_2d(x)
    m, k = x2d.shape
    n = weight_t.shape[1]

    # Tile sizes: sublane/lane aligned, capped so the double-buffered working
    # set is a few MiB (safe for v7x's 64 MiB VMEM; MXU-friendly on v5e/v6e).
    tm = min(_round_up(m, 8), 256)
    tn = min(_round_up(n, 128), 256)
    # K: keep the whole contraction in one tile when it fits (no zero-pad
    # FLOPs, no K loop); otherwise tile at 512 and zero-pad to a multiple.
    tk = k if k <= 512 else 512

    mp = _round_up(m, tm)
    np_ = _round_up(n, tn)
    kp = _round_up(k, tk)

    xp = x2d if (mp == m and kp == k) else jnp.pad(x2d, ((0, mp - m), (0, kp - k)))
    wp = weight_t if (kp == k and np_ == n) else jnp.pad(
        weight_t, ((0, kp - k), (0, np_ - n)))
    bp = (bias if np_ == n else jnp.pad(bias, (0, np_ - n))).reshape(1, np_)

    out = pl.pallas_call(
        _linear_kernel,
        out_shape=jax.ShapeDtypeStruct((mp, np_), x.dtype),
        grid_spec=pltpu.PrefetchScalarGridSpec(
            num_scalar_prefetch=0,
            grid=(mp // tm, np_ // tn, kp // tk),
            in_specs=[
                pl.BlockSpec((tm, tk), lambda i, j, kk: (i, kk)),
                pl.BlockSpec((tk, tn), lambda i, j, kk: (kk, j)),
                pl.BlockSpec((1, tn), lambda i, j, kk: (0, j)),
            ],
            out_specs=pl.BlockSpec((tm, tn), lambda i, j, kk: (i, j)),
            scratch_shapes=[pltpu.VMEM((tm, tn), jnp.float32)],
        ),
        compiler_params=pltpu.CompilerParams(
            dimension_semantics=("parallel", "parallel", "arbitrary"),
            vmem_limit_bytes=_VMEM_LIMIT),
        cost_estimate=pl.CostEstimate(
            flops=2 * mp * kp * np_,
            transcendentals=0,
            bytes_accessed=(mp * kp + kp * np_ + mp * np_) * x.dtype.itemsize),
    )(xp, wp, bp)

    return out[:m, :n].reshape(lead + (n,))


def layernorm_layer(x, gamma, beta, eps=1e-5):
    """nn.LayerNorm over the last dim."""
    x2d, lead = _flatten_2d(x)
    m, d = x2d.shape

    tm = min(_round_up(m, 8), 256)
    mp = _round_up(m, tm)
    xp = x2d if mp == m else jnp.pad(x2d, ((0, mp - m), (0, 0)))

    out = pl.pallas_call(
        functools.partial(_layernorm_kernel, eps=eps),
        out_shape=jax.ShapeDtypeStruct((mp, d), x.dtype),
        grid_spec=pltpu.PrefetchScalarGridSpec(
            num_scalar_prefetch=0,
            grid=(mp // tm,),
            in_specs=[
                pl.BlockSpec((tm, d), lambda i: (i, 0)),
                # gamma/beta: constant index_map -> DMA'd once, VMEM-resident.
                pl.BlockSpec((1, d), lambda i: (0, 0)),
                pl.BlockSpec((1, d), lambda i: (0, 0)),
            ],
            out_specs=pl.BlockSpec((tm, d), lambda i: (i, 0)),
        ),
        compiler_params=pltpu.CompilerParams(
            dimension_semantics=("parallel",),
            vmem_limit_bytes=_VMEM_LIMIT),
    )(xp, gamma.reshape(1, d), beta.reshape(1, d))

    return out[:m].reshape(lead + (d,))


def affine_layer(x, weight, bias):
    """Affine module: x * weight + bias (weight/bias are (features,))."""
    x2d, lead = _flatten_2d(x)
    m, d = x2d.shape

    tm = min(_round_up(m, 8), 256)
    mp = _round_up(m, tm)
    xp = x2d if mp == m else jnp.pad(x2d, ((0, mp - m), (0, 0)))

    out = pl.pallas_call(
        _affine_kernel,
        out_shape=jax.ShapeDtypeStruct((mp, d), x.dtype),
        grid_spec=pltpu.PrefetchScalarGridSpec(
            num_scalar_prefetch=0,
            grid=(mp // tm,),
            in_specs=[
                pl.BlockSpec((tm, d), lambda i: (i, 0)),
                pl.BlockSpec((1, d), lambda i: (0, 0)),
                pl.BlockSpec((1, d), lambda i: (0, 0)),
            ],
            out_specs=pl.BlockSpec((tm, d), lambda i: (i, 0)),
        ),
        compiler_params=pltpu.CompilerParams(
            dimension_semantics=("parallel",),
            vmem_limit_bytes=_VMEM_LIMIT),
    )(xp, weight.reshape(1, d), bias.reshape(1, d))

    return out[:m].reshape(lead + (d,))


# ----------------------------------------------------------------------------
# `Layer` equivalent: pick the sub-layer from a config dict
# ----------------------------------------------------------------------------

class PallasLayer:
    """JAX/Pallas equivalent of `Layer(layer_config, input_size)`.

    Supported config types: 'linear', 'ln'/'layernorm'/'norm', 'affine',
    'view', 'squeeze', 'dropout' (identity at inference).
    """

    def __init__(self, config, input_size, key):
        self.type = config["type"]
        d_in = input_size[-1]
        if self.type == "linear":
            n_out = config["size"]
            k_w, _ = jax.random.split(key)
            # Deterministic init (matches nn.Linear shapes, synthetic values).
            bound = 1.0 / jnp.sqrt(d_in)
            self.weight = jax.random.uniform(
                k_w, (n_out, d_in), jnp.float32, -bound, bound)
            # Pre-transpose once so the kernel never transposes on the XLU.
            self.weight_t = jnp.asarray(self.weight.T)          # (K, N)
            self.bias = jnp.zeros((n_out,), jnp.float32)
        elif self.type in ("norm", "layernorm", "ln"):
            self.weight = jnp.ones((d_in,), jnp.float32)
            self.bias = jnp.zeros((d_in,), jnp.float32)
            self.eps = config.get("args", {}).get("eps", 1e-5)
        elif self.type == "affine":
            self.weight = jnp.full((d_in,), float(config["weight"]), jnp.float32)
            self.bias = jnp.full((d_in,), float(config["bias"]), jnp.float32)
        elif self.type in ("view", "squeeze", "dropout"):
            self.config = config
        else:
            # TODO(synk): 'bn'/'bsbn' (BatchNorm with running stats) and
            # 'slice'/'function' configs not implemented in this synthetic port.
            raise ValueError(f"Unsupported config type: {self.type}")

    def __call__(self, x):
        if self.type == "linear":
            return linear_layer(x, self.weight_t, self.bias)
        if self.type in ("norm", "layernorm", "ln"):
            return layernorm_layer(x, self.weight, self.bias, self.eps)
        if self.type == "affine":
            return affine_layer(x, self.weight, self.bias)
        if self.type == "view":
            shape = tuple(-1 if s == "batch_size" else s
                          for s in self.config["shape"])
            return x.reshape(shape)
        if self.type == "squeeze":
            return jnp.squeeze(x, axis=self.config.get("dim", None))
        if self.type == "dropout":
            return x  # inference mode: identity
        raise ValueError(self.type)


# ----------------------------------------------------------------------------
# Main: build small deterministic inputs, run each kernel, verify vs pure JAX
# ----------------------------------------------------------------------------

if __name__ == "__main__":
    key = jax.random.PRNGKey(0)
    k_x, k_lin = jax.random.split(key)

    batch, seq, hidden = 2, 8, 32
    x = jax.random.normal(k_x, (batch, seq, hidden), dtype=jnp.float32)

    # --- linear ---
    lin = PallasLayer({"type": "linear", "size": 64}, [batch, seq, hidden], k_lin)
    y_lin = lin(x)
    y_lin_ref = x @ lin.weight.T + lin.bias
    assert y_lin.shape == (batch, seq, 64)
    assert jnp.allclose(y_lin, y_lin_ref, atol=1e-4, rtol=1e-4)

    # --- layernorm ---
    ln = PallasLayer({"type": "ln", "args": {}}, [batch, seq, hidden], k_lin)
    y_ln = ln(x)
    mu = jnp.mean(x, axis=-1, keepdims=True)
    var = jnp.mean((x - mu) ** 2, axis=-1, keepdims=True)
    y_ln_ref = (x - mu) / jnp.sqrt(var + 1e-5) * ln.weight + ln.bias
    assert jnp.allclose(y_ln, y_ln_ref, atol=1e-4, rtol=1e-4)

    # --- affine ---
    aff = PallasLayer({"type": "affine", "weight": 2.0, "bias": 0.5},
                      [batch, seq, hidden], k_lin)
    y_aff = aff(x)
    assert jnp.allclose(y_aff, x * 2.0 + 0.5, atol=1e-5)

    # --- view / squeeze / dropout glue ---
    vw = PallasLayer({"type": "view", "shape": ["batch_size", seq * hidden]},
                     [batch, seq, hidden], k_lin)
    assert vw(x).shape == (batch, seq * hidden)
    dp = PallasLayer({"type": "dropout"}, [batch, seq, hidden], k_lin)
    assert jnp.allclose(dp(x), x)

    jax.block_until_ready((y_lin, y_ln, y_aff))
    print("KERNEL_OK")
</pallas_src>

<mosaic_0001>
module attributes {stable_mosaic.version = 11 : i64} {
  func.func @_linear_kernel(%arg0: i32, %arg1: i32, %arg2: i32, %arg3: memref<16x32xf32, #tpu.memory_space<vmem>>, %arg4: memref<32x128xf32, #tpu.memory_space<vmem>>, %arg5: memref<1x128xf32, #tpu.memory_space<vmem>>, %arg6: memref<16x128xf32, #tpu.memory_space<vmem>>, %arg7: memref<16x128xf32, #tpu.memory_space<vmem>>) attributes {dimension_semantics = [#tpu.dimension_semantics<parallel>, #tpu.dimension_semantics<parallel>, #tpu.dimension_semantics<arbitrary>], iteration_bounds = array<i64: 1, 1, 1>, scalar_prefetch = 0 : i64, scratch_operands = 1 : i64, tpu.core_type = #tpu.core_type<tc>, window_params = [{transform_indices = @transform_0, window_bounds = array<i64: 16, 32>}, {transform_indices = @transform_1, window_bounds = array<i64: 32, 128>}, {transform_indices = @transform_2, window_bounds = array<i64: 1, 128>}, {transform_indices = @transform_3, window_bounds = array<i64: 16, 128>}]} {
    %c0_i32 = arith.constant 0 : i32
    %0 = arith.cmpi eq, %arg2, %c0_i32 : i32
    %1 = arith.extui %0 : i1 to i32
    %c0_i32_0 = arith.constant 0 : i32
    %2 = arith.cmpi ne, %1, %c0_i32_0 : i32
    scf.if %2 {
      %cst_10 = arith.constant 0.000000e+00 : f32
      %12 = vector.broadcast %cst_10 : f32 to vector<16x128xf32>
      %c0_11 = arith.constant 0 : index
      %c0_12 = arith.constant 0 : index
      %13 = vector.load %arg7[%c0_11, %c0_12] : memref<16x128xf32, #tpu.memory_space<vmem>>, vector<16x128xf32>
      tpu.vector_store %arg7[%c0_11, %c0_12], %12 {strides = array<i32>} : memref<16x128xf32, #tpu.memory_space<vmem>>, vector<16x128xf32>,
    } else {
    }
    %c0 = arith.constant 0 : index
    %c0_1 = arith.constant 0 : index
    %3 = vector.load %arg7[%c0, %c0_1] : memref<16x128xf32, #tpu.memory_space<vmem>>, vector<16x128xf32>
    %c0_2 = arith.constant 0 : index
    %c0_3 = arith.constant 0 : index
    %4 = vector.load %arg3[%c0_2, %c0_3] : memref<16x32xf32, #tpu.memory_space<vmem>>, vector<16x32xf32>
    %c0_4 = arith.constant 0 : index
    %c0_5 = arith.constant 0 : index
    %5 = vector.load %arg4[%c0_4, %c0_5] : memref<32x128xf32, #tpu.memory_space<vmem>>, vector<32x128xf32>
    %cst = arith.constant dense<0.000000e+00> : vector<16x128xf32>
    %6 = tpu.matmul %4, %5, %cst {dimension_numbers = #tpu.dot_dimension_numbers<[1], [0], [0], [1], [0, 0, 1, 1], [], []>} : vector<16x32xf32>, vector<32x128xf32>, vector<16x128xf32> -> vector<16x128xf32>
    %7 = arith.addf %3, %6 : vector<16x128xf32>
    %c0_6 = arith.constant 0 : index
    %c0_7 = arith.constant 0 : index
    %8 = vector.load %arg7[%c0_6, %c0_7] : memref<16x128xf32, #tpu.memory_space<vmem>>, vector<16x128xf32>
    tpu.vector_store %arg7[%c0_6, %c0_7], %7 {strides = array<i32>} : memref<16x128xf32, #tpu.memory_space<vmem>>, vector<16x128xf32>,
    %c0_i32_8 = arith.constant 0 : i32
    %9 = arith.cmpi eq, %arg2, %c0_i32_8 : i32
    %10 = arith.extui %9 : i1 to i32
    %c0_i32_9 = arith.constant 0 : i32
    %11 = arith.cmpi ne, %10, %c0_i32_9 : i32
    scf.if %11 {
      %c0_10 = arith.constant 0 : index
      %c0_11 = arith.constant 0 : index
      %12 = vector.load %arg7[%c0_10, %c0_11] : memref<16x128xf32, #tpu.memory_space<vmem>>, vector<16x128xf32>
      %c0_12 = arith.constant 0 : index
      %c0_13 = arith.constant 0 : index
      %13 = vector.load %arg5[%c0_12, %c0_13] : memref<1x128xf32, #tpu.memory_space<vmem>>, vector<1x128xf32>
      %14 = vector.broadcast %13 : vector<1x128xf32> to vector<16x128xf32>
      %15 = arith.addf %12, %14 : vector<16x128xf32>
      %c0_14 = arith.constant 0 : index
      %c0_15 = arith.constant 0 : index
      %16 = vector.load %arg6[%c0_14, %c0_15] : memref<16x128xf32, #tpu.memory_space<vmem>>, vector<16x128xf32>
      tpu.vector_store %arg6[%c0_14, %c0_15], %15 {strides = array<i32>} : memref<16x128xf32, #tpu.memory_space<vmem>>, vector<16x128xf32>,
    } else {
    }
    return
  }
  func.func @transform_0(%arg0: i32, %arg1: i32, %arg2: i32) -> (i32, i32) {
    %c0_i32 = arith.constant 0 : i32
    return %arg0, %arg2 : i32, i32
  }
  func.func @transform_1(%arg0: i32, %arg1: i32, %arg2: i32) -> (i32, i32) {
    %c0_i32 = arith.constant 0 : i32
    return %arg2, %arg1 : i32, i32
  }
  func.func @transform_2(%arg0: i32, %arg1: i32, %arg2: i32) -> (i32, i32) {
    %c0_i32 = arith.constant 0 : i32
    %c0_i32_0 = arith.constant 0 : i32
    return %c0_i32, %arg1 : i32, i32
  }
  func.func @transform_3(%arg0: i32, %arg1: i32, %arg2: i32) -> (i32, i32) {
    %c0_i32 = arith.constant 0 : i32
    return %arg0, %arg1 : i32, i32
  }
}

</mosaic_0001>

<bundles_post_ra>
// kernel: tpu_custom_call.1
= control target key start
LH: loop header
LB: loop body
LE: loop exit
PB: predicated region body
PF: predicated region fallthrough
CT: control target
= control target key end

     0   :  { %8 = vsyncpa [#allocation4], 0  ;;  %s264_s0 = inlined_call_operand.hbm [shape: f32[16,32], index: 0, kind: input, shape index: {}]   ;;  %s265_s1 = inlined_call_operand.hbm [shape: f32[32,128], index: 1, kind: input, shape index: {}]   ;;  %s266_s2 = inlined_call_operand.vmem [shape: f32[1,128], index: 2, kind: input, shape index: {}]   ;;  %s267_s3 = inlined_call_operand.hbm [shape: f32[16,128], index: 3, kind: output, shape index: {}]  }
   0x1   :  { %9 = vsyncpa [#allocation7], 0 }
   0x2   :  { %10 = vsyncpa [#allocation5], 0  ;;  %s15_s14 = sshll.u32 %s264_s0, 4  ;;  %s218_s15 = smov [#allocation3]   ;;  %s16_s14 = int_to_ptr.hbm [resolvable:$true] %s15_s14 }
   0x3   :  { %s17_s16 = sshll.u32 %s218_s15, 4  ;;  %s28_s19 = sshll.u32 %s265_s1, 4  ;;  %s18_s16 = int_to_ptr.vmem [resolvable:$true] %s17_s16  ;;  %s29_s19 = int_to_ptr.hbm [resolvable:$true] %s28_s19 }
   0x4   :  { %s219_s20 = smov 128   ;;  %s220_s21 = smov 8  }
   0x5   :  { %23 = dma.hbm_to_vmem [thread:$0]  %s16_s14, 256, %s18_s16, [#allocation4], %s219_s20, %s219_s20, %s220_s21  }
   0x6   :  { %s221_s22 = smov [#allocation6]  }
   0x7   :  { %s30_s23 = sshll.u32 %s221_s22, 4  ;;  %s31_s23 = int_to_ptr.vmem [resolvable:$true] %s30_s23 }
   0x8   :  { %36 = dma.hbm_to_vmem [thread:$0]  %s29_s19, 512, %s31_s23, [#allocation7], %s219_s20, %s219_s20, %s220_s21  }
   0x9   :  { %212 = dma.done.wait [#allocation4], 256  }
   0xa   :  { %213 = vsyncadd [#allocation4], 4294967040 }
   0xb   :  { %214 = dma.done.wait [#allocation7], 512  }
   0xc   :  { %215 = vsyncadd [#allocation7], 4294966784  ;;  %v60_v0 = vld [vmem:[#allocation6 + $0x18] sm:$0xff]  ;;  %v59_v1 = vld [vmem:[#allocation6 + $0x10] sm:$0xff]  ;;  %vm61_vm0 = vcmask 261120   ;;  %s222_s24 = smov [#allocation8]  }
   0xd   :  { %80 = vmatpush.msra.mxu0 %v60_v0  ;;  %130 = vmatpush.msra.mxu1 %v60_v0  ;;  %v58_v2 = vld [vmem:[#allocation6 + $0x8] sm:$0xff]  ;;  %v57_v3 = vld [vmem:[#allocation6] sm:$0xff]  ;;  %v55_v4 = vld [vmem:[#allocation3] sm:$0xff]  ;;  %s112_s25 = sshll.u32 %s222_s24, 4  ;;  %s114_s28 = sshll.u32 %s267_s3, 4  ;;  %s113_s25 = int_to_ptr.vmem [resolvable:$true] %s112_s25  ;;  %s115_s28 = int_to_ptr.hbm [resolvable:$true] %s114_s28 }
   0xe   :  { %v56_v5 = vld [vmem:[#allocation3 + $0x8] sm:$0xff]  ;;  %v139_v6 = vld [vmem:[%s266_s2] ss:$0 sm:$0xff] }
   0xf   :  { %81 = vmatpush.msra.mxu0 %v59_v1  ;;  %131 = vmatpush.msra.mxu1 %v59_v1 }
  0x11   :  { %82 = vmatpush.msra.mxu0 %v58_v2  ;;  %132 = vmatpush.msra.mxu1 %v58_v2 }
  0x13   :  { %83 = vmatpush.msra.mxu0 %v57_v3  ;;  %133 = vmatpush.msra.mxu1 %v57_v3 }
  0x14   :  { %128 = vmatmul.msk.f32.vlgmr.msra.gmra.mxu0 %vm61_vm0, %v55_v4  ;;  %129 = vmatmul.msk.f32.vlgmr.msra.gmra.mxu1 %vm61_vm0, %v56_v5 }
  0x91   :  { %v85_v7 = vpop.f32.mrf.mxu0  ;;  %v88_v8 = vpop.f32.mrf.mxu1 }
  0x92   :  { %v104_v9 = vadd.f32 %v139_v6, %v85_v7  ;;  %v105_v10 = vadd.f32 %v139_v6, %v88_v8 }
  0x94   :  { %106 = vst [vmem:[#allocation8] sm:$0xff] %v104_v9 }
  0x95   :  { %107 = vst [vmem:[#allocation8 + $0x8] sm:$0xff] %v105_v10 }
  0x96   :  { %120 = dma.vmem_to_hbm [thread:$0]  %s113_s25, 256, %s115_s28, [#allocation5], %s219_s20, %s219_s20, %s220_s21  }
  0x97   :  { %216 = dma.done.wait [#allocation5], 256  }
  0x98   :  { %217 = vsyncadd [#allocation5], 4294967040 }
  0x99   :  { %125 = vsyncpa [#allocation4], 1 }
  0x9a   :  { %126 = vsyncpa [#allocation7], 1 }
  0x9b   :  { %127 = vsyncpa [#allocation5], 1 }

</bundles_post_ra>
